<compile_context>
chip_gen: v7x
topology: tpu7x:2x2x1
jax: 0.10.0
libtpu: 0.0.40
codegen_flags: <defaults>
</compile_context>

<pallas_src>
import numpy as np
import jax
import jax.numpy as jnp
from jax import lax
from jax.experimental import pallas as pl
from jax.experimental.pallas import tpu as pltpu


# ------------------------------ sizing helpers --------------------------------
def _round_up(x, m):
    return ((x + m - 1) // m) * m


def _vmem_capacity_bytes():
    """Per-core VMEM capacity (v5e/v6e 128 MiB, v7x 64 MiB); safe fallback."""
    try:
        info = pltpu.get_tpu_info()
        cap = int(getattr(info, "vmem_capacity_bytes", 0) or 0)
        if cap > 0:
            return cap
    except Exception:
        pass
    return 64 << 20          # conservative: v7x per-TensorCore VMEM


_VMEM_CAP = _vmem_capacity_bytes()
# Explicit scoped-VMEM limit handed to Mosaic (default is only 16/32 MiB).
_VMEM_LIMIT = int(min(0.80 * _VMEM_CAP, 100 * (1 << 20)))
# Budget used when sizing tiles / time chunks (headroom for compiler temps).
_VMEM_BUDGET = int(0.75 * _VMEM_LIMIT)


def _divisor_tiles(n, align, cap):
    """Divisors of n that are multiples of `align` and <= cap, descending."""
    ts = [t for t in range(align, min(n, cap) + 1, align) if n % t == 0]
    return sorted(ts, reverse=True) if ts else [n]


def _batch_tile(bp, align):
    """Batch tile (multiple of `align`).  Gives >= 2 tiles once the batch is
    large enough so the 'parallel' batch grid axis can use both v7x cores."""
    if bp <= align:
        return bp
    cands = [t for t in range(align, bp // 2 + 1, align) if bp % t == 0]
    return max(cands) if cands else bp


def _matmul_tiles(n, k, ncols, x_bytes, w_bytes, out_bytes, budget):
    """Row/column tiles for the hoisted GEMM, sized to the VMEM budget."""
    row_align = 16 if min(x_bytes, out_bytes) < 4 else 8   # bf16 sublane pack
    for tg in _divisor_tiles(ncols, 128, 1024):
        for tn in _divisor_tiles(n, row_align, 512):
            need = (2 * tn * k * x_bytes          # x block, double-buffered
                    + 2 * k * tg * w_bytes        # w column block
                    + 2 * tn * tg * out_bytes     # out block
                    + 8 * tg)                     # bias
            if need <= budget:
                return tn, tg
    return (_divisor_tiles(n, row_align, 512)[-1],
            _divisor_tiles(ncols, 128, 1024)[-1])


def _time_chunk(T, per_tc_bytes, fixed_bytes, budget, cap=256):
    """Largest divisor of T (<= cap timesteps) whose chunk fits the budget.
    TODO(synk): support a masked remainder chunk for awkward prime-ish T."""
    best = 1
    for tc in range(1, min(T, cap) + 1):
        if T % tc == 0 and fixed_bytes + tc * per_tc_bytes <= budget:
            best = tc
    return best


# -------------------------- GEMM + bias (row/col tiled) ------------------------
def _matmul_bias_kernel(x_ref, w_ref, b_ref, o_ref):
    x = x_ref[...].astype(w_ref.dtype)      # bf16 MXU operands, f32 accumulate
    acc = jnp.dot(x, w_ref[...], preferred_element_type=jnp.float32)
    o_ref[...] = (acc + b_ref[...]).astype(o_ref.dtype)


def matmul_bias(x, w, b, out_dtype):
    """x: (N, K) @ w: (K, C) + b: (1, C) -> (N, C) in out_dtype (f32 acc)."""
    n, k = x.shape
    c = w.shape[-1]
    tn, tg = _matmul_tiles(n, k, c, x.dtype.itemsize, w.dtype.itemsize,
                           np.dtype(out_dtype).itemsize, _VMEM_BUDGET)
    # TODO(synk): tile K as well for very large input widths (not needed here).
    return pl.pallas_call(
        _matmul_bias_kernel,
        out_shape=jax.ShapeDtypeStruct((n, c), out_dtype),
        grid_spec=pltpu.PrefetchScalarGridSpec(
            num_scalar_prefetch=0,
            grid=(n // tn, c // tg),
            in_specs=[pl.BlockSpec((tn, k), lambda i, j: (i, 0)),
                      pl.BlockSpec((k, tg), lambda i, j: (0, j)),
                      pl.BlockSpec((1, tg), lambda i, j: (0, j))],
            out_specs=pl.BlockSpec((tn, tg), lambda i, j: (i, j)),
        ),
        compiler_params=pltpu.CompilerParams(
            dimension_semantics=("parallel", "parallel"),
            vmem_limit_bytes=_VMEM_LIMIT),
    )(x, w, b)


# --------------------------- LSTM recurrence kernels ---------------------------
def _lstm_chunk_steps(gx_ref, whh_ref, hbuf, h0, c0):
    """Run the timesteps of one chunk.  h/c carried as values; each step's h
    is written into the f32 VMEM scratch `hbuf` (lane/sublane dense)."""
    tc = gx_ref.shape[0]
    hp = hbuf.shape[-1]
    whh = whh_ref[...]                       # grid-invariant, VMEM resident

    def step(t, carry):
        h, c = carry
        # Only the small recurrent matmul is on the serial critical path; the
        # input projection was hoisted into the big GEMM (gx_ref).
        gates = gx_ref[t].astype(jnp.float32) + jnp.dot(
            h.astype(whh.dtype), whh, preferred_element_type=jnp.float32)
        i = jax.nn.sigmoid(gates[:, 0 * hp:1 * hp])
        f = jax.nn.sigmoid(gates[:, 1 * hp:2 * hp])
        g = jnp.tanh(gates[:, 2 * hp:3 * hp])
        o = jax.nn.sigmoid(gates[:, 3 * hp:4 * hp])
        c_new = f * c + i * g
        h_new = o * jnp.tanh(c_new)
        hbuf[t] = h_new
        return h_new, c_new

    # Fixed moderate unroll: LLO scheduling visibility without vreg blowup.
    return lax.fori_loop(0, tc, step, (h0, c0), unroll=min(8, tc))


def _lstm_seq_kernel(gx_ref, whh_ref, h0_ref, c0_ref,
                     out_ref, hN_ref, cN_ref, h_scr, c_scr, hbuf):
    n = pl.program_id(1)                     # time-chunk axis ("arbitrary")

    @pl.when(n == 0)
    def _():
        h_scr[...] = h0_ref[...]
        c_scr[...] = c0_ref[...]

    h_fin, c_fin = _lstm_chunk_steps(gx_ref, whh_ref, hbuf,
                                     h_scr[...], c_scr[...])
    h_scr[...] = h_fin
    c_scr[...] = c_fin
    # One dense chunk store (bf16 inter-layer activation when enabled).
    out_ref[...] = hbuf[...].astype(out_ref.dtype)

    @pl.when(n == pl.num_programs(1) - 1)
    def _():
        hN_ref[...] = h_fin
        cN_ref[...] = c_fin


def _lstm_fc_kernel(gx_ref, whh_ref, h0_ref, c0_ref, fcw_ref, fcb_ref,
                    y_ref, hN_ref, cN_ref, h_scr, c_scr, hbuf):
    n = pl.program_id(1)

    @pl.when(n == 0)
    def _():
        h_scr[...] = h0_ref[...]
        c_scr[...] = c0_ref[...]

    h_fin, c_fin = _lstm_chunk_steps(gx_ref, whh_ref, hbuf,
                                     h_scr[...], c_scr[...])
    h_scr[...] = h_fin
    c_scr[...] = c_fin
    # Fused final Linear: the (T, B, Hp) last-layer activation never touches
    # HBM; one small MXU matmul per chunk hides under the recurrence.
    tc, tb, hp = hbuf.shape
    hc = hbuf[...].reshape(tc * tb, hp).astype(fcw_ref.dtype)
    y = jnp.dot(hc, fcw_ref[...], preferred_element_type=jnp.float32) \
        + fcb_ref[...]
    y_ref[...] = y.reshape(tc, tb, y_ref.shape[-1]).astype(y_ref.dtype)

    @pl.when(n == pl.num_programs(1) - 1)
    def _():
        hN_ref[...] = h_fin
        cN_ref[...] = c_fin


def lstm_layer(gx, whh, h0, c0, *, out_dtype, tb):
    """Intermediate layer: (T,Bp,4Hp) gates -> ((T,Bp,Hp) out_dtype, hN, cN)."""
    T, Bp, G = gx.shape
    Hp = whh.shape[0]
    out_b = np.dtype(out_dtype).itemsize
    per_tc = (2 * tb * G * gx.dtype.itemsize        # gx block (double buffer)
              + 2 * tb * Hp * out_b                 # out block (double buffer)
              + tb * Hp * 4)                        # hbuf scratch
    fixed = 2 * Hp * G * whh.dtype.itemsize + 10 * tb * Hp * 4
    tc = _time_chunk(T, per_tc, fixed, _VMEM_BUDGET)
    return pl.pallas_call(
        _lstm_seq_kernel,
        out_shape=(jax.ShapeDtypeStruct((T, Bp, Hp), out_dtype),
                   jax.ShapeDtypeStruct((Bp, Hp), jnp.float32),
                   jax.ShapeDtypeStruct((Bp, Hp), jnp.float32)),
        grid_spec=pltpu.PrefetchScalarGridSpec(
            num_scalar_prefetch=0,
            grid=(Bp // tb, T // tc),               # (batch-parallel, time)
            in_specs=[
                pl.BlockSpec((tc, tb, G), lambda b, n: (n, b, 0)),
                # Grid-invariant: DMA'd once, resident in VMEM.
                pl.BlockSpec((Hp, G), lambda b, n: (0, 0)),
                pl.BlockSpec((tb, Hp), lambda b, n: (b, 0)),
                pl.BlockSpec((tb, Hp), lambda b, n: (b, 0)),
            ],
            out_specs=[
                pl.BlockSpec((tc, tb, Hp), lambda b, n: (n, b, 0)),
                pl.BlockSpec((tb, Hp), lambda b, n: (b, 0)),
                pl.BlockSpec((tb, Hp), lambda b, n: (b, 0)),
            ],
            scratch_shapes=[pltpu.VMEM((tb, Hp), jnp.float32),
                            pltpu.VMEM((tb, Hp), jnp.float32),
                            pltpu.VMEM((tc, tb, Hp), jnp.float32)],
        ),
        compiler_params=pltpu.CompilerParams(
            dimension_semantics=("parallel", "arbitrary"),
            vmem_limit_bytes=_VMEM_LIMIT),
    )(gx, whh, h0, c0)


def lstm_layer_fc(gx, whh, h0, c0, fcw, fcb, *, tb):
    """Last layer with fused Linear: returns ((T,Bp,Op) f32, hN, cN)."""
    T, Bp, G = gx.shape
    Hp = whh.shape[0]
    Op = fcw.shape[-1]
    per_tc = (2 * tb * G * gx.dtype.itemsize
              + 2 * tb * Op * 4
              + tb * Hp * 4)
    fixed = (2 * Hp * G * whh.dtype.itemsize
             + 2 * Hp * Op * fcw.dtype.itemsize
             + 10 * tb * Hp * 4 + 8 * Op)
    tc = _time_chunk(T, per_tc, fixed, _VMEM_BUDGET)
    return pl.pallas_call(
        _lstm_fc_kernel,
        out_shape=(jax.ShapeDtypeStruct((T, Bp, Op), jnp.float32),
                   jax.ShapeDtypeStruct((Bp, Hp), jnp.float32),
                   jax.ShapeDtypeStruct((Bp, Hp), jnp.float32)),
        grid_spec=pltpu.PrefetchScalarGridSpec(
            num_scalar_prefetch=0,
            grid=(Bp // tb, T // tc),
            in_specs=[
                pl.BlockSpec((tc, tb, G), lambda b, n: (n, b, 0)),
                pl.BlockSpec((Hp, G), lambda b, n: (0, 0)),
                pl.BlockSpec((tb, Hp), lambda b, n: (b, 0)),
                pl.BlockSpec((tb, Hp), lambda b, n: (b, 0)),
                pl.BlockSpec((Hp, Op), lambda b, n: (0, 0)),
                pl.BlockSpec((1, Op), lambda b, n: (0, 0)),
            ],
            out_specs=[
                pl.BlockSpec((tc, tb, Op), lambda b, n: (n, b, 0)),
                pl.BlockSpec((tb, Hp), lambda b, n: (b, 0)),
                pl.BlockSpec((tb, Hp), lambda b, n: (b, 0)),
            ],
            scratch_shapes=[pltpu.VMEM((tb, Hp), jnp.float32),
                            pltpu.VMEM((tb, Hp), jnp.float32),
                            pltpu.VMEM((tc, tb, Hp), jnp.float32)],
        ),
        compiler_params=pltpu.CompilerParams(
            dimension_semantics=("parallel", "arbitrary"),
            vmem_limit_bytes=_VMEM_LIMIT),
    )(gx, whh, h0, c0, fcw, fcb)


# --------------------------------- The module ---------------------------------
class RnnModelPallas:
    """nn.LSTM(input, state, n_layers, batch_first=True) + nn.Linear(state, out)."""

    def __init__(self, input_size, output_size, state_size, n_layers, key,
                 mxu_dtype=jnp.bfloat16):
        self.input_size = input_size
        self.output_size = output_size
        self.state_size = state_size
        self.n_layers = n_layers
        # MXU operands / streamed activations in this dtype; accumulation and
        # all elementwise gate math stays f32 inside the kernels.
        self.mxu_dtype = np.dtype(mxu_dtype)
        self.act_dtype = self.mxu_dtype

        H = state_size
        Hp = _round_up(H, 128)                       # lane-padded hidden
        Op = _round_up(max(output_size, 1), 128)     # lane-padded FC output
        self.state_size_padded = Hp
        self.output_size_padded = Op

        k = 1.0 / np.sqrt(state_size)
        keys = jax.random.split(key, 4 * n_layers + 2)
        self.wih, self.whh, self.bih, self.bhh = [], [], [], []
        ki = 0
        for l in range(n_layers):
            in_dim = input_size if l == 0 else state_size
            self.wih.append(jax.random.uniform(
                keys[ki], (4 * H, in_dim), jnp.float32, -k, k)); ki += 1
            self.whh.append(jax.random.uniform(
                keys[ki], (4 * H, H), jnp.float32, -k, k)); ki += 1
            self.bih.append(jax.random.uniform(
                keys[ki], (4 * H,), jnp.float32, -k, k)); ki += 1
            self.bhh.append(jax.random.uniform(
                keys[ki], (4 * H,), jnp.float32, -k, k)); ki += 1
        self.fc_w = jax.random.uniform(
            keys[ki], (output_size, state_size), jnp.float32, -k, k); ki += 1
        self.fc_b = jax.random.uniform(
            keys[ki], (output_size,), jnp.float32, -k, k)

        # --- kernel-ready parameters (built once) -----------------------------
        # Wih -> (Din, 4*Hp), Whh -> (Hp, 4*Hp) in mxu_dtype; bias (bih+bhh)
        # -> (1, 4*Hp) f32.  Gate g occupies lanes [g*Hp, g*Hp+H); padded
        # rows/cols/lanes are zero so padded h/c lanes stay exactly zero.
        self.wih_pad, self.whh_pad, self.bias_pad = [], [], []
        for l in range(n_layers):
            in_real = input_size if l == 0 else H
            in_pad = input_size if l == 0 else Hp
            wih_p = jnp.zeros((in_pad, 4 * Hp), jnp.float32)
            whh_p = jnp.zeros((Hp, 4 * Hp), jnp.float32)
            b_p = jnp.zeros((1, 4 * Hp), jnp.float32)
            bias = self.bih[l] + self.bhh[l]
            for g in range(4):
                wih_p = wih_p.at[:in_real, g * Hp:g * Hp + H].set(
                    self.wih[l][g * H:(g + 1) * H, :].T)
                whh_p = whh_p.at[:H, g * Hp:g * Hp + H].set(
                    self.whh[l][g * H:(g + 1) * H, :].T)
                b_p = b_p.at[0, g * Hp:g * Hp + H].set(bias[g * H:(g + 1) * H])
            self.wih_pad.append(wih_p.astype(self.mxu_dtype))
            self.whh_pad.append(whh_p.astype(self.mxu_dtype))
            self.bias_pad.append(b_p)
        self.fc_w_pad = (jnp.zeros((Hp, Op), jnp.float32)
                         .at[:H, :output_size].set(self.fc_w.T)
                         .astype(self.mxu_dtype))
        self.fc_b_pad = (jnp.zeros((1, Op), jnp.float32)
                         .at[0, :output_size].set(self.fc_b))

    def __call__(self, x, state=None):
        B, T, _ = x.shape
        H, Hp = self.state_size, self.state_size_padded
        O = self.output_size
        L = self.n_layers
        sub = 16 if self.act_dtype.itemsize < 4 else 8   # bf16 sublane packing
        Bp = _round_up(B, sub)                           # sublane-padded batch
        tb = _batch_tile(Bp, sub)                        # v7x batch-parallel tile

        if state is None:
            h0p = jnp.zeros((L, Bp, Hp), jnp.float32)
            c0p = jnp.zeros((L, Bp, Hp), jnp.float32)
        else:
            h0, c0 = state
            h0p = jnp.zeros((L, Bp, Hp), jnp.float32).at[:, :B, :H].set(h0)
            c0p = jnp.zeros((L, Bp, Hp), jnp.float32).at[:, :B, :H].set(c0)

        # Time-major, batch padded to a sublane multiple.
        act = jnp.zeros((T, Bp, x.shape[-1]), jnp.float32).at[:, :B, :].set(
            jnp.transpose(x.astype(jnp.float32), (1, 0, 2)))

        h_fin, c_fin = [], []
        y_pad = None
        for l in range(L):
            din = act.shape[-1]
            # 1) Hoisted input projection: one big row/col-tiled GEMM.
            gx = matmul_bias(act.reshape(T * Bp, din), self.wih_pad[l],
                             self.bias_pad[l], out_dtype=self.act_dtype)
            gx = gx.reshape(T, Bp, 4 * Hp)
            # 2) Recurrence over (batch tiles x time chunks).
            if l < L - 1:
                act, hN, cN = lstm_layer(gx, self.whh_pad[l], h0p[l], c0p[l],
                                         out_dtype=self.act_dtype, tb=tb)
            else:
                # TODO(synk): additionally fuse the next layer's input
                # projection into the recurrent epilogue when stacking deeper.
                y_pad, hN, cN = lstm_layer_fc(gx, self.whh_pad[l], h0p[l],
                                              c0p[l], self.fc_w_pad,
                                              self.fc_b_pad, tb=tb)
            h_fin.append(hN[:B, :H])
            c_fin.append(cN[:B, :H])

        # PyTorch flattens the batch-first (B, T, H) output before the Linear,
        # so rows must be ordered (b, t).
        out = jnp.transpose(y_pad[:, :B, :O], (1, 0, 2)).reshape(B * T, O)
        return out, (jnp.stack(h_fin), jnp.stack(c_fin))


# ------------------------------ pure-JAX reference -----------------------------
def reference_forward(model, x, state=None):
    B, T, _ = x.shape
    H = model.state_size
    if state is None:
        h = [jnp.zeros((B, H), jnp.float32) for _ in range(model.n_layers)]
        c = [jnp.zeros((B, H), jnp.float32) for _ in range(model.n_layers)]
    else:
        h = list(state[0]); c = list(state[1])
    layer_in = x.astype(jnp.float32)
    for l in range(model.n_layers):
        outs = []
        hl, cl = h[l], c[l]
        for t in range(T):
            gates = (layer_in[:, t] @ model.wih[l].T + model.bih[l]
                     + hl @ model.whh[l].T + model.bhh[l])
            i = jax.nn.sigmoid(gates[:, 0 * H:1 * H])
            f = jax.nn.sigmoid(gates[:, 1 * H:2 * H])
            g = jnp.tanh(gates[:, 2 * H:3 * H])
            o = jax.nn.sigmoid(gates[:, 3 * H:4 * H])
            cl = f * cl + i * g
            hl = o * jnp.tanh(cl)
            outs.append(hl)
        layer_in = jnp.stack(outs, axis=1)
        h[l], c[l] = hl, cl
    out = layer_in.reshape(-1, H) @ model.fc_w.T + model.fc_b
    return out, (jnp.stack(h), jnp.stack(c))


if __name__ == "__main__":
    batch, seq = 2, 8
    input_size, state_size, output_size, n_layers = 16, 32, 8, 2

    key = jax.random.PRNGKey(0)
    k_param, k_x = jax.random.split(key)
    x = jax.random.normal(k_x, (batch, seq, input_size), jnp.float32)

    # 1) Exact-precision path: proves the kernels reproduce the PyTorch
    #    module's forward semantics bit-for-bit (up to f32 rounding).
    model_f32 = RnnModelPallas(input_size, output_size, state_size, n_layers,
                               k_param, mxu_dtype=jnp.float32)
    out32, (h32, c32) = model_f32(x)
    jax.block_until_ready((out32, h32, c32))
    ref_out, (ref_h, ref_c) = reference_forward(model_f32, x)
    np.testing.assert_allclose(np.asarray(out32), np.asarray(ref_out),
                               rtol=1e-4, atol=1e-4)
    np.testing.assert_allclose(np.asarray(h32), np.asarray(ref_h),
                               rtol=1e-4, atol=1e-4)
    np.testing.assert_allclose(np.asarray(c32), np.asarray(ref_c),
                               rtol=1e-4, atol=1e-4)

    # 2) Default fast path: bf16 MXU operands / activation storage with f32
    #    accumulation -> looser tolerance vs the pure-f32 reference (expected).
    model = RnnModelPallas(input_size, output_size, state_size, n_layers,
                           k_param)
    out, (hN, cN) = model(x)
    jax.block_until_ready((out, hN, cN))
    np.testing.assert_allclose(np.asarray(out), np.asarray(ref_out),
                               rtol=5e-2, atol=5e-2)
    np.testing.assert_allclose(np.asarray(hN), np.asarray(ref_h),
                               rtol=5e-2, atol=5e-2)
    np.testing.assert_allclose(np.asarray(cN), np.asarray(ref_c),
                               rtol=5e-2, atol=5e-2)

    assert out.shape == (batch * seq, output_size)
    assert hN.shape == (n_layers, batch, state_size)
    assert cN.shape == (n_layers, batch, state_size)
    print("KERNEL_OK")
</pallas_src>

<mosaic_0001>
module attributes {stable_mosaic.version = 11 : i64} {
  func.func @_matmul_bias_kernel(%arg0: i32, %arg1: i32, %arg2: memref<64x16xf32, #tpu.memory_space<vmem>>, %arg3: memref<16x512xf32, #tpu.memory_space<vmem>>, %arg4: memref<1x512xf32, #tpu.memory_space<vmem>>, %arg5: memref<64x512xf32, #tpu.memory_space<vmem>>) attributes {dimension_semantics = [#tpu.dimension_semantics<parallel>, #tpu.dimension_semantics<parallel>], iteration_bounds = array<i64: 1, 1>, scalar_prefetch = 0 : i64, scratch_operands = 0 : i64, tpu.core_type = #tpu.core_type<tc>, window_params = [{transform_indices = @transform_0, window_bounds = array<i64: 64, 16>}, {transform_indices = @transform_1, window_bounds = array<i64: 16, 512>}, {transform_indices = @transform_2, window_bounds = array<i64: 1, 512>}, {transform_indices = @transform_3, window_bounds = array<i64: 64, 512>}]} {
    %c0 = arith.constant 0 : index
    %c0_0 = arith.constant 0 : index
    %0 = vector.load %arg2[%c0, %c0_0] : memref<64x16xf32, #tpu.memory_space<vmem>>, vector<64x16xf32>
    %c0_1 = arith.constant 0 : index
    %c0_2 = arith.constant 0 : index
    %1 = vector.load %arg3[%c0_1, %c0_2] : memref<16x512xf32, #tpu.memory_space<vmem>>, vector<16x512xf32>
    %cst = arith.constant dense<0.000000e+00> : vector<64x512xf32>
    %2 = tpu.matmul %0, %1, %cst {dimension_numbers = #tpu.dot_dimension_numbers<[1], [0], [0], [1], [0, 0, 1, 1], [], []>} : vector<64x16xf32>, vector<16x512xf32>, vector<64x512xf32> -> vector<64x512xf32>
    %c0_3 = arith.constant 0 : index
    %c0_4 = arith.constant 0 : index
    %3 = vector.load %arg4[%c0_3, %c0_4] : memref<1x512xf32, #tpu.memory_space<vmem>>, vector<1x512xf32>
    %4 = vector.broadcast %3 : vector<1x512xf32> to vector<64x512xf32>
    %5 = arith.addf %2, %4 : vector<64x512xf32>
    %c0_5 = arith.constant 0 : index
    %c0_6 = arith.constant 0 : index
    %6 = vector.load %arg5[%c0_5, %c0_6] : memref<64x512xf32, #tpu.memory_space<vmem>>, vector<64x512xf32>
    tpu.vector_store %arg5[%c0_5, %c0_6], %5 {strides = array<i32>} : memref<64x512xf32, #tpu.memory_space<vmem>>, vector<64x512xf32>,
    return
  }
  func.func @transform_0(%arg0: i32, %arg1: i32) -> (i32, i32) {
    %c0_i32 = arith.constant 0 : i32
    %c0_i32_0 = arith.constant 0 : i32
    return %arg0, %c0_i32 : i32, i32
  }
  func.func @transform_1(%arg0: i32, %arg1: i32) -> (i32, i32) {
    %c0_i32 = arith.constant 0 : i32
    %c0_i32_0 = arith.constant 0 : i32
    return %c0_i32, %arg1 : i32, i32
  }
  func.func @transform_2(%arg0: i32, %arg1: i32) -> (i32, i32) {
    %c0_i32 = arith.constant 0 : i32
    %c0_i32_0 = arith.constant 0 : i32
    return %c0_i32, %arg1 : i32, i32
  }
  func.func @transform_3(%arg0: i32, %arg1: i32) -> (i32, i32) {
    %c0_i32 = arith.constant 0 : i32
    return %arg0, %arg1 : i32, i32
  }
}

</mosaic_0001>

<bundles_post_ra>
// kernel: tpu_custom_call.1
= control target key start
LH: loop header
LB: loop body
LE: loop exit
PB: predicated region body
PF: predicated region fallthrough
CT: control target
= control target key end

     0   :  { %v404_v7 = vmov 0.0   ;;  %vm53_vm0 = vcmask 130048   ;;  %s547_s0 = inlined_call_operand.vmem [shape: f32[64,16], index: 0, kind: input, shape index: {}]   ;;  %s548_s1 = inlined_call_operand.vmem [shape: f32[16,512], index: 1, kind: input, shape index: {}]   ;;  %s549_s2 = inlined_call_operand.vmem [shape: f32[1,512], index: 2, kind: input, shape index: {}]   ;;  %s550_s3 = inlined_call_operand.hbm [shape: f32[64,512], index: 3, kind: output, shape index: {}]  }
   0x1   :  { %v24_v0 = vld [vmem:[%s548_s1 + $0x8] sm:$0xff]  ;;  %v26_v2 = vld [vmem:[%s548_s1 + $0x18] sm:$0xff]  ;;  %v23_v5 = vld [vmem:[%s548_s1] sm:$0xff]  ;;  %142 = vmatprep.mubr.f32.mxu0 %v404_v7  ;;  %255 = vmatprep.mubr.f32.mxu1 %v404_v7 }
   0x2   :  { %v28_v1 = vld [vmem:[%s548_s1 + $0x28] sm:$0xff]  ;;  %v30_v4 = vld [vmem:[%s548_s1 + $0x38] sm:$0xff]  ;;  %v27_v6 = vld [vmem:[%s548_s1 + $0x20] sm:$0xff] }
   0x3   :  { %v368_v3 = vpack.c.bf16 %v28_v1, %v24_v0  ;;  %v372_v8 = vpack.c.bf16 %v30_v4, %v26_v2  ;;  %v370_v9 = vpack.c.bf16 %v27_v6, %v23_v5  ;;  %v25_v10 = vld [vmem:[%s548_s1 + $0x10] sm:$0xff]  ;;  %v15_v13 = vld [vmem:[%s547_s0] sm:$0xff] }
   0x4   :  { %v29_v11 = vld [vmem:[%s548_s1 + $0x30] sm:$0xff] }
   0x5   :  { %369 = vmatprep.subr.bf16.mxu0 %v368_v3  ;;  %v374_v12 = vpack.c.bf16 %v29_v11, %v25_v10  ;;  %373 = vmatprep.subr.bf16.mxu1 %v372_v8 }
   0x6   :  { %371 = vmatpush1.bf16.msra.mxu0 %v370_v9 }
   0x7   :  { %375 = vmatpush1.bf16.msra.mxu1 %v374_v12 }
   0x8   :  { %8 = vsyncpa [#allocation3], 0  ;;  %v16_v14 = vld [vmem:[%s547_s0 + $0x8] sm:$0xff]  ;;  %v17_v15 = vld [vmem:[%s547_s0 + $0x10] sm:$0xff]  ;;  %v33_v21 = vlaneseq }
   0x9   :  { %352 = vmatmul.mubr.msk.f32.vlgmr.msra.gmra.mrb[0].mxu0 %vm53_vm0, %v15_v13  ;;  %v18_v16 = vld [vmem:[%s547_s0 + $0x18] sm:$0xff]  ;;  %v19_v17 = vld [vmem:[%s547_s0 + $0x20] sm:$0xff]  ;;  %v20_v18 = vld [vmem:[%s547_s0 + $0x28] sm:$0xff] }
   0xa   :  { %360 = vmatmul.mubr.msk.f32.vlgmr.msra.gmra.mrb[0].mxu1 %vm53_vm0, %v15_v13  ;;  %148 = vmatprep.mubr.f32.mxu0 %v404_v7  ;;  %v21_v19 = vld [vmem:[%s547_s0 + $0x30] sm:$0xff]  ;;  %v22_v20 = vld [vmem:[%s547_s0 + $0x38] sm:$0xff]  ;;  %v34_v22 = vshrl.u32 %v33_v21, 7  ;;  %v31_v24 = vld [vmem:[%s549_s2] sm:$0xf]  ;;  %s405_s0 = smov [#allocation2]  }
   0xb   :  { %261 = vmatprep.mubr.f32.mxu1 %v404_v7  ;;  %s341_s2 = sshll.u32 %s405_s0, 4  ;;  %s342_s2 = int_to_ptr.vmem [resolvable:$true] %s341_s2 }
   0xc   :  { %v35_v23 = vsub.s32 0, %v34_v22  ;;  %v43_v25 = vsub.s32 2, %v34_v22  ;;  %v39_v26 = vsub.s32 1, %v34_v22  ;;  %v47_v27 = vsub.s32 3, %v34_v22  ;;  %s380_s18 = scalar_lea.vmem %s342_s2, 4096  ;;  %p385_p1 = scmp.lt.s32.totalorder %s342_s2, %s342_s2 }
   0xd   :  { %353 = vmatmul.mubr.msk.f32.gmra.mrb[2].mxu0 %vm53_vm0, %v16_v14  ;;  %p381_p0 = scmp.ne.s32.totalorder %s342_s2, %s380_s18  ;;  %p386_p2 = scmp.lt.s32.totalorder %s380_s18, %s380_s18 }
   0xe   :  { %361 = vmatmul.mubr.msk.f32.gmra.mrb[2].mxu1 %vm53_vm0, %v16_v14  ;;  %154 = vmatprep.mubr.f32.mxu0 %v404_v7  ;;  %v495_v28 = vrot.slane %v31_v24, %v35_v23  ;;  %v497_v29 = vrot.slane %v31_v24, %v43_v25  ;;  %v499_v30 = vrot.slane %v31_v24, %v39_v26 }
   0xf   :  { %267 = vmatprep.mubr.f32.mxu1 %v404_v7  ;;  %v501_v31 = vrot.slane %v31_v24, %v47_v27  ;;  %p387_p3 = por %p386_p2, %p385_p1 }
  0x11   :  { %354 = vmatmul.mubr.msk.f32.gmra.mrb[4].mxu0 %vm53_vm0, %v17_v15  ;;  %p388_p4 = pnand %p387_p3, %p381_p0 }
  0x12   :  { %362 = vmatmul.mubr.msk.f32.gmra.mrb[4].mxu1 %vm53_vm0, %v17_v15  ;;  %160 = vmatprep.mubr.f32.mxu0 %v404_v7 }
  0x13   :  { %273 = vmatprep.mubr.f32.mxu1 %v404_v7 }
  0x15   :  { %355 = vmatmul.mubr.msk.f32.gmra.mrb[6].mxu0 %vm53_vm0, %v18_v16 }
  0x16   :  { %363 = vmatmul.mubr.msk.f32.gmra.mrb[6].mxu1 %vm53_vm0, %v18_v16  ;;  %166 = vmatprep.mubr.f32.mxu0 %v404_v7 }
  0x17   :  { %279 = vmatprep.mubr.f32.mxu1 %v404_v7 }
  0x19   :  { %356 = vmatmul.mubr.msk.f32.gmra.mrb[8].mxu0 %vm53_vm0, %v19_v17 }
  0x1a   :  { %364 = vmatmul.mubr.msk.f32.gmra.mrb[8].mxu1 %vm53_vm0, %v19_v17  ;;  %172 = vmatprep.mubr.f32.mxu0 %v404_v7 }
  0x1b   :  { %285 = vmatprep.mubr.f32.mxu1 %v404_v7 }
  0x1d   :  { %357 = vmatmul.mubr.msk.f32.gmra.mrb[10].mxu0 %vm53_vm0, %v20_v18 }
  0x1e   :  { %365 = vmatmul.mubr.msk.f32.gmra.mrb[10].mxu1 %vm53_vm0, %v20_v18  ;;  %178 = vmatprep.mubr.f32.mxu0 %v404_v7 }
  0x1f   :  { %291 = vmatprep.mubr.f32.mxu1 %v404_v7 }
  0x21   :  { %358 = vmatmul.mubr.msk.f32.gmra.mrb[12].mxu0 %vm53_vm0, %v21_v19 }
  0x22   :  { %366 = vmatmul.mubr.msk.f32.gmra.mrb[12].mxu1 %vm53_vm0, %v21_v19  ;;  %184 = vmatprep.mubr.f32.mxu0 %v404_v7 }
  0x23   :  { %297 = vmatprep.mubr.f32.mxu1 %v404_v7 }
  0x25   :  { %359 = vmatmul.mubr.msk.f32.gmra.mrb[14].mxu0 %vm53_vm0, %v22_v20 }
  0x26   :  { %367 = vmatmul.mubr.msk.f32.gmra.mrb[14].mxu1 %vm53_vm0, %v22_v20 }
  0xdc   :  { %v144_v32 = vpop.f32.mrb[0].mxu0 }
  0xdd   :  { %v145_v33 = vadd.f32 %v144_v32, %v495_v28  ;;  %v257_v34 = vpop.f32.mrb[0].mxu1  ;;  %v146_v35 = vpop.f32.mrb[1].mxu0 }
  0xde   :  { %v258_v36 = vadd.f32 %v257_v34, %v497_v29  ;;  %v147_v37 = vadd.f32 %v146_v35, %v499_v30  ;;  %v259_v38 = vpop.f32.mrb[1].mxu1 }
  0xdf   :  { %304 = vst [vmem:[#allocation2] sm:$0xff] %v145_v33  ;;  %v260_v39 = vadd.f32 %v259_v38, %v501_v31 }
  0xe0   :  { %306 = vst [vmem:[#allocation2 + $0x10] sm:$0xff] %v258_v36  ;;  %305 = vst [vmem:[#allocation2 + $0x8] sm:$0xff] %v147_v37  ;;  %v150_v40 = vpop.f32.mrb[2].mxu0 }
  0xe1   :  { %307 = vst [vmem:[#allocation2 + $0x18] sm:$0xff] %v260_v39  ;;  %v151_v41 = vadd.f32 %v150_v40, %v495_v28  ;;  %v263_v42 = vpop.f32.mrb[2].mxu1  ;;  %v152_v43 = vpop.f32.mrb[3].mxu0 }
  0xe2   :  { %v264_v44 = vadd.f32 %v263_v42, %v497_v29  ;;  %v153_v45 = vadd.f32 %v152_v43, %v499_v30  ;;  %v265_v46 = vpop.f32.mrb[3].mxu1 }
  0xe3   :  { %308 = vst [vmem:[#allocation2 + $0x20] sm:$0xff] %v151_v41  ;;  %v266_v47 = vadd.f32 %v265_v46, %v501_v31 }
  0xe4   :  { %310 = vst [vmem:[#allocation2 + $0x30] sm:$0xff] %v264_v44  ;;  %309 = vst [vmem:[#allocation2 + $0x28] sm:$0xff] %v153_v45  ;;  %v156_v48 = vpop.f32.mrb[4].mxu0 }
  0xe5   :  { %311 = vst [vmem:[#allocation2 + $0x38] sm:$0xff] %v266_v47  ;;  %v157_v49 = vadd.f32 %v156_v48, %v495_v28  ;;  %v269_v50 = vpop.f32.mrb[4].mxu1  ;;  %v158_v51 = vpop.f32.mrb[5].mxu0 }
  0xe6   :  { %v270_v52 = vadd.f32 %v269_v50, %v497_v29  ;;  %v159_v53 = vadd.f32 %v158_v51, %v499_v30  ;;  %v271_v54 = vpop.f32.mrb[5].mxu1 }
  0xe7   :  { %312 = vst [vmem:[#allocation2 + $0x40] sm:$0xff] %v157_v49  ;;  %v272_v55 = vadd.f32 %v271_v54, %v501_v31 }
  0xe8   :  { %314 = vst [vmem:[#allocation2 + $0x50] sm:$0xff] %v270_v52  ;;  %313 = vst [vmem:[#allocation2 + $0x48] sm:$0xff] %v159_v53  ;;  %v162_v56 = vpop.f32.mrb[6].mxu0 }
  0xe9   :  { %315 = vst [vmem:[#allocation2 + $0x58] sm:$0xff] %v272_v55  ;;  %v163_v57 = vadd.f32 %v162_v56, %v495_v28  ;;  %v275_v58 = vpop.f32.mrb[6].mxu1  ;;  %v164_v59 = vpop.f32.mrb[7].mxu0 }
  0xea   :  { %v276_v60 = vadd.f32 %v275_v58, %v497_v29  ;;  %v165_v61 = vadd.f32 %v164_v59, %v499_v30  ;;  %v277_v62 = vpop.f32.mrb[7].mxu1 }
  0xeb   :  { %316 = vst [vmem:[#allocation2 + $0x60] sm:$0xff] %v163_v57  ;;  %v278_v63 = vadd.f32 %v277_v62, %v501_v31 }
  0xec   :  { %318 = vst [vmem:[#allocation2 + $0x70] sm:$0xff] %v276_v60  ;;  %317 = vst [vmem:[#allocation2 + $0x68] sm:$0xff] %v165_v61  ;;  %v168_v0 = vpop.f32.mrb[8].mxu0 }
  0xed   :  { %319 = vst [vmem:[#allocation2 + $0x78] sm:$0xff] %v278_v63  ;;  %v169_v1 = vadd.f32 %v168_v0, %v495_v28  ;;  %v281_v2 = vpop.f32.mrb[8].mxu1  ;;  %v170_v3 = vpop.f32.mrb[9].mxu0 }
  0xee   :  { %v282_v4 = vadd.f32 %v281_v2, %v497_v29  ;;  %v171_v5 = vadd.f32 %v170_v3, %v499_v30  ;;  %v283_v6 = vpop.f32.mrb[9].mxu1 }
  0xef   :  { %320 = vst [vmem:[#allocation2 + $0x80] sm:$0xff] %v169_v1  ;;  %v284_v7 = vadd.f32 %v283_v6, %v501_v31 }
  0xf0   :  { %322 = vst [vmem:[#allocation2 + $0x90] sm:$0xff] %v282_v4  ;;  %321 = vst [vmem:[#allocation2 + $0x88] sm:$0xff] %v171_v5  ;;  %v174_v8 = vpop.f32.mrb[10].mxu0 }
  0xf1   :  { %323 = vst [vmem:[#allocation2 + $0x98] sm:$0xff] %v284_v7  ;;  %v175_v9 = vadd.f32 %v174_v8, %v495_v28  ;;  %v287_v10 = vpop.f32.mrb[10].mxu1  ;;  %v176_v11 = vpop.f32.mrb[11].mxu0 }
  0xf2   :  { %v288_v12 = vadd.f32 %v287_v10, %v497_v29  ;;  %v177_v13 = vadd.f32 %v176_v11, %v499_v30  ;;  %v289_v14 = vpop.f32.mrb[11].mxu1 }
  0xf3   :  { %324 = vst [vmem:[#allocation2 + $0xa0] sm:$0xff] %v175_v9  ;;  %v290_v15 = vadd.f32 %v289_v14, %v501_v31 }
  0xf4   :  { %326 = vst [vmem:[#allocation2 + $0xb0] sm:$0xff] %v288_v12  ;;  %325 = vst [vmem:[#allocation2 + $0xa8] sm:$0xff] %v177_v13  ;;  %v180_v16 = vpop.f32.mrb[12].mxu0 }
  0xf5   :  { %327 = vst [vmem:[#allocation2 + $0xb8] sm:$0xff] %v290_v15  ;;  %v181_v17 = vadd.f32 %v180_v16, %v495_v28  ;;  %v293_v18 = vpop.f32.mrb[12].mxu1  ;;  %v182_v19 = vpop.f32.mrb[13].mxu0 }
  0xf6   :  { %v294_v20 = vadd.f32 %v293_v18, %v497_v29  ;;  %v183_v21 = vadd.f32 %v182_v19, %v499_v30  ;;  %v295_v22 = vpop.f32.mrb[13].mxu1 }
  0xf7   :  { %328 = vst [vmem:[#allocation2 + $0xc0] sm:$0xff] %v181_v17  ;;  %v296_v23 = vadd.f32 %v295_v22, %v501_v31 }
  0xf8   :  { %330 = vst [vmem:[#allocation2 + $0xd0] sm:$0xff] %v294_v20  ;;  %329 = vst [vmem:[#allocation2 + $0xc8] sm:$0xff] %v183_v21  ;;  %v186_v24 = vpop.f32.mrb[14].mxu0 }
  0xf9   :  { %331 = vst [vmem:[#allocation2 + $0xd8] sm:$0xff] %v296_v23  ;;  %v187_v25 = vadd.f32 %v186_v24, %v495_v28  ;;  %v299_v26 = vpop.f32.mrb[14].mxu1  ;;  %v188_v27 = vpop.f32.mrb[15].mxu0 }
  0xfa   :  { %v300_v32 = vadd.f32 %v299_v26, %v497_v29  ;;  %v189_v33 = vadd.f32 %v188_v27, %v499_v30  ;;  %v301_v34 = vpop.f32.mrb[15].mxu1 }
  0xfb   :  { %332 = vst [vmem:[#allocation2 + $0xe0] sm:$0xff] %v187_v25  ;;  %v302_v35 = vadd.f32 %v301_v34, %v501_v31 }
  0xfc   :  { %334 = vst [vmem:[#allocation2 + $0xf0] sm:$0xff] %v300_v32  ;;  %333 = vst [vmem:[#allocation2 + $0xe8] sm:$0xff] %v189_v33 }
  0xfd   :  { %335 = vst [vmem:[#allocation2 + $0xf8] sm:$0xff] %v302_v35 }
  0xfe   :  { %391 = shalt.err (!%p388_p4)
}
  0xff   :  { %s392_s21 = scalar_lea.hbm %s550_s3, 4096 }
 0x100   :  { %p393_p5 = scmp.ne.s32.totalorder %s550_s3, %s392_s21  ;;  %p396_p6 = scmp.lt.u32.totalorder %s392_s21, %s550_s3 }
 0x102   :  { %p398_p7 = pnand %p396_p6, %p393_p5 }
 0x104   :  { %401 = shalt.err (!%p398_p7)
}
 0x105   :  { %s406_s26 = smov 512   ;;  %s407_s27 = smov 32  }
 0x106   :  { %347 = dma.vmem_to_hbm [thread:$0]  %s342_s2, 4096, %s550_s3, [#allocation3], %s406_s26, %s406_s26, %s407_s27  }
 0x107   :  { %402 = dma.done.wait [#allocation3], 4096  }
 0x108   :  { %403 = vsyncadd [#allocation3], 4294963200 }
 0x109   :  { %351 = vsyncpa [#allocation3], 1 }

</bundles_post_ra>
